<compile_context>
chip_gen: v6e
topology: v6e:2x2x1
jax: 0.10.0
libtpu: 0.0.40
codegen_flags: <defaults>
</compile_context>

<pallas_src>
import math
import functools

import jax
import jax.numpy as jnp
from jax import lax
from jax.experimental import pallas as pl
from jax.experimental.pallas import tpu as pltpu

_INV_SQRT2 = 1.0 / math.sqrt(2.0)
_VMEM_LIMIT_BYTES = 64 * 1024 * 1024    # raise scoped VMEM (v5e default is 16 MiB)
_VMEM_BUDGET_BYTES = 40 * 1024 * 1024   # resident working-set cap (fits v7x 64 MiB/TC)


# ---------------------------------------------------------------------------
# activations (match the PyTorch reference exactly; gelu is erf-based)
# ---------------------------------------------------------------------------
def _gelu_erf(x):
    return x * 0.5 * (1.0 + lax.erf(x * _INV_SQRT2))


def _relu(x):
    return jnp.maximum(x, 0.0)


def _swish(x):
    return x * jax.nn.sigmoid(x)


_ACT2FN = {"gelu": _gelu_erf, "relu": _relu, "swish": _swish}


# ---------------------------------------------------------------------------
# kernels
# ---------------------------------------------------------------------------
def _matmul_nt(x, w):
    # x: (tm, tk), w: (tn, tk) -> (tm, tn) f32.  Contract the LAST dims of both
    # so the (I, H) nn.Linear weight is used directly (no wrapper transpose).
    return lax.dot_general(
        x, w,
        dimension_numbers=(((1,), (1,)), ((), ())),
        preferred_element_type=jnp.float32,
    )


def _kernel_single_k(x_ref, w_ref, b_ref, o_ref, *, act):
    """Whole K in one tile: no accumulator, no init/finalize overhead."""
    y = _matmul_nt(x_ref[...], w_ref[...]) + b_ref[...].astype(jnp.float32)
    o_ref[...] = act(y).astype(o_ref.dtype)


def _kernel_k_reduce(x_ref, w_ref, b_ref, o_ref, acc_ref, *, act):
    """K split across grid axis 2; f32 VMEM accumulator, activation epilogue on last step."""
    @pl.when(pl.program_id(2) == 0)
    def _():
        acc_ref[...] = jnp.zeros_like(acc_ref)

    acc_ref[...] += _matmul_nt(x_ref[...], w_ref[...])

    @pl.when(pl.program_id(2) == pl.num_programs(2) - 1)
    def _():
        y = acc_ref[...] + b_ref[...].astype(jnp.float32)
        o_ref[...] = act(y).astype(o_ref.dtype)


def _round_up(x, m):
    return ((x + m - 1) // m) * m


# ---------------------------------------------------------------------------
# wrapper
# ---------------------------------------------------------------------------
def bert_intermediate(hidden_states, weight, bias, *,
                      hidden_act="gelu",
                      tm=None, tn=None, tk=None,
                      compute_dtype=None,
                      vmem_budget_bytes=_VMEM_BUDGET_BYTES):
    """hidden_states: (B, S, H)
       weight:        (I, H)   -- PyTorch nn.Linear convention (NOT transposed)
       bias:          (I,)
       hidden_act:    "gelu" (erf-exact) | "relu" | "swish"
       compute_dtype: MXU input dtype; defaults to bf16 when inputs are f32
                      (accumulation and epilogue stay f32).
       returns:       (B, S, I) in hidden_states.dtype"""
    B, S, H = hidden_states.shape
    I, H_w = weight.shape
    assert H == H_w, (H, H_w)
    M = B * S

    act = _ACT2FN[hidden_act]
    out_dtype = hidden_states.dtype

    if compute_dtype is not None:
        mxu_dtype = compute_dtype
    elif hidden_states.dtype == jnp.float32:
        # f32 MXU is several x slower and doubles x/W DMA bytes; accumulation
        # and the bias + activation epilogue are still f32.
        mxu_dtype = jnp.bfloat16
    else:
        mxu_dtype = hidden_states.dtype

    in_bytes = jnp.dtype(mxu_dtype).itemsize
    out_bytes = jnp.dtype(out_dtype).itemsize

    Kp_full = _round_up(H, 128)   # single-tile K covers BERT widths (768/1024/...)
    Ip_full = _round_up(I, 128)

    user_tiled = (tn is not None) or (tk is not None)

    # ------------------- resident-weight fast path -------------------------
    # Whole weight + bias VMEM-resident (constant index_map -> fetched once);
    # only x / out stream; 1-D grid over M ("parallel" for megacore).
    if not user_tiled:
        tm_res = tm if tm is not None else min(256, _round_up(M, 16))
        tm_res = _round_up(tm_res, 16)
        resident_bytes = (
            2 * Ip_full * Kp_full * in_bytes        # weight (double-buffered slot)
            + 2 * Ip_full * 4                       # bias (f32)
            + 2 * tm_res * Kp_full * in_bytes       # x tile, double-buffered
            + 2 * tm_res * Ip_full * out_bytes      # out tile, double-buffered
            + tm_res * Ip_full * 4)                 # f32 matmul/act intermediate
        if resident_bytes <= vmem_budget_bytes:
            Mp = _round_up(M, tm_res)
            x = hidden_states.reshape(M, H).astype(mxu_dtype)
            w = weight.astype(mxu_dtype)            # keep (I, H): no transpose
            b2d = bias.reshape(1, I).astype(jnp.float32)
            if (Mp, Kp_full) != (M, H):
                x = jnp.pad(x, ((0, Mp - M), (0, Kp_full - H)))
            if (Ip_full, Kp_full) != (I, H):
                w = jnp.pad(w, ((0, Ip_full - I), (0, Kp_full - H)))
            if Ip_full != I:
                b2d = jnp.pad(b2d, ((0, 0), (0, Ip_full - I)))

            nm = Mp // tm_res
            grid_spec = pltpu.PrefetchScalarGridSpec(
                num_scalar_prefetch=0,
                grid=(nm,),
                in_specs=[
                    pl.BlockSpec((tm_res, Kp_full), lambda i: (i, 0)),   # x tile
                    pl.BlockSpec((Ip_full, Kp_full), lambda i: (0, 0)),  # W resident
                    pl.BlockSpec((1, Ip_full), lambda i: (0, 0)),        # bias resident
                ],
                out_specs=pl.BlockSpec((tm_res, Ip_full), lambda i: (i, 0)),
                scratch_shapes=[],
            )
            out = pl.pallas_call(
                functools.partial(_kernel_single_k, act=act),
                out_shape=jax.ShapeDtypeStruct((Mp, Ip_full), out_dtype),
                grid_spec=grid_spec,
                compiler_params=pltpu.CompilerParams(
                    dimension_semantics=("parallel",),
                    vmem_limit_bytes=_VMEM_LIMIT_BYTES),
            )(x, w, b2d)
            if (Mp, Ip_full) != (M, I):
                out = out[:M, :I]
            return out.reshape(B, S, I)

    # ------------------- tiled fallback (big weight / user-forced tiles) ---
    tm = tm if tm is not None else min(512, _round_up(M, 16))
    tn = tn if tn is not None else min(1024, Ip_full)
    tk = tk if tk is not None else min(2048, Kp_full)
    tm = _round_up(tm, 16)    # sublane dim of x / out tiles (bf16-safe)
    tn = _round_up(tn, 128)   # lane dim of out tile (lane-dense stores)
    tk = _round_up(tk, 128)   # lane dim of x / w tiles

    Mp, Ip, Kp = _round_up(M, tm), _round_up(I, tn), _round_up(H, tk)

    x = hidden_states.reshape(M, H).astype(mxu_dtype)
    w = weight.astype(mxu_dtype)                    # keep (I, H): no transpose
    b2d = bias.reshape(1, I).astype(jnp.float32)
    if (Mp, Kp) != (M, H):
        x = jnp.pad(x, ((0, Mp - M), (0, Kp - H)))
    if (Ip, Kp) != (I, H):
        w = jnp.pad(w, ((0, Ip - I), (0, Kp - H)))
    if Ip != I:
        b2d = jnp.pad(b2d, ((0, 0), (0, Ip - I)))

    nm, nn_, nk = Mp // tm, Ip // tn, Kp // tk

    if nk == 1:
        grid_spec = pltpu.PrefetchScalarGridSpec(
            num_scalar_prefetch=0,
            grid=(nm, nn_),
            in_specs=[
                pl.BlockSpec((tm, tk), lambda i, j: (i, 0)),   # x tile
                pl.BlockSpec((tn, tk), lambda i, j: (j, 0)),   # W tile (I, H)
                pl.BlockSpec((1, tn), lambda i, j: (0, j)),    # bias tile
            ],
            out_specs=pl.BlockSpec((tm, tn), lambda i, j: (i, j)),
            scratch_shapes=[],
        )
        kernel = functools.partial(_kernel_single_k, act=act)
        dim_sem = ("parallel", "parallel")
    else:
        grid_spec = pltpu.PrefetchScalarGridSpec(
            num_scalar_prefetch=0,
            grid=(nm, nn_, nk),
            in_specs=[
                pl.BlockSpec((tm, tk), lambda i, j, k: (i, k)),   # x tile
                pl.BlockSpec((tn, tk), lambda i, j, k: (j, k)),   # W tile (I, H)
                pl.BlockSpec((1, tn), lambda i, j, k: (0, j)),    # bias tile
            ],
            out_specs=pl.BlockSpec((tm, tn), lambda i, j, k: (i, j)),
            scratch_shapes=[pltpu.VMEM((tm, tn), jnp.float32)],
        )
        kernel = functools.partial(_kernel_k_reduce, act=act)
        dim_sem = ("parallel", "parallel", "arbitrary")

    out = pl.pallas_call(
        kernel,
        out_shape=jax.ShapeDtypeStruct((Mp, Ip), out_dtype),
        grid_spec=grid_spec,
        compiler_params=pltpu.CompilerParams(
            dimension_semantics=dim_sem,
            vmem_limit_bytes=_VMEM_LIMIT_BYTES),
    )(x, w, b2d)

    if (Mp, Ip) != (M, I):
        out = out[:M, :I]
    return out.reshape(B, S, I)


# ---------------------------------------------------------------------------
# reference + tests
# ---------------------------------------------------------------------------
def _reference(hidden_states, weight, bias):
    y = hidden_states @ weight.T + bias
    return y * 0.5 * (1.0 + lax.erf(y * _INV_SQRT2))


if __name__ == "__main__":
    key = jax.random.PRNGKey(0)

    # ---- test 1: small BERT-ish config, resident-weight fast path ----------
    batch, seq, hidden, intermediate = 2, 8, 32, 128
    k_x, k_w, k_b, key = jax.random.split(key, 4)
    hs = jax.random.normal(k_x, (batch, seq, hidden), dtype=jnp.float32)
    w = jax.random.normal(k_w, (intermediate, hidden), dtype=jnp.float32) * 0.02
    b = jax.random.normal(k_b, (intermediate,), dtype=jnp.float32) * 0.02
    ref = _reference(hs, w, b)

    # default path: bf16 MXU inputs, f32 accumulation/epilogue -> loose tol.
    out_default = jax.block_until_ready(bert_intermediate(hs, w, b))
    assert out_default.shape == (batch, seq, intermediate)
    assert jnp.allclose(out_default, ref, atol=2e-2, rtol=2e-2), "default (bf16) mismatch"

    # full-f32 path -> tight tol.
    out_f32 = jax.block_until_ready(
        bert_intermediate(hs, w, b, compute_dtype=jnp.float32))
    assert jnp.allclose(out_f32, ref, atol=1e-5, rtol=1e-5), "f32 resident mismatch"

    # ---- test 2: force the tiled K-reduction (accumulator) path ------------
    batch2, seq2, hidden2, intermediate2 = 2, 8, 256, 384
    k_x, k_w, k_b, key = jax.random.split(key, 4)
    hs2 = jax.random.normal(k_x, (batch2, seq2, hidden2), dtype=jnp.float32)
    w2 = jax.random.normal(k_w, (intermediate2, hidden2), dtype=jnp.float32) * 0.02
    b2 = jax.random.normal(k_b, (intermediate2,), dtype=jnp.float32) * 0.02
    ref2 = _reference(hs2, w2, b2)

    out2 = jax.block_until_ready(
        bert_intermediate(hs2, w2, b2, tm=16, tn=128, tk=128,
                          compute_dtype=jnp.float32))   # grid (1, 3, 2)
    assert out2.shape == (batch2, seq2, intermediate2)
    assert jnp.allclose(out2, ref2, atol=1e-4, rtol=1e-4), "K-reduction mismatch"

    # ---- test 3: tiled single-K fallback (force tn only) -------------------
    out3 = jax.block_until_ready(
        bert_intermediate(hs2, w2, b2, tn=128, compute_dtype=jnp.float32))
    assert jnp.allclose(out3, ref2, atol=1e-4, rtol=1e-4), "tiled single-K mismatch"

    print("KERNEL_OK")
</pallas_src>

<mosaic_0001>
module attributes {stable_mosaic.version = 11 : i64} {
  func.func @_kernel_single_k(%arg0: i32, %arg1: memref<16x128xbf16, #tpu.memory_space<vmem>>, %arg2: memref<128x128xbf16, #tpu.memory_space<vmem>>, %arg3: memref<1x128xf32, #tpu.memory_space<vmem>>, %arg4: memref<16x128xf32, #tpu.memory_space<vmem>>) attributes {dimension_semantics = [#tpu.dimension_semantics<parallel>], iteration_bounds = array<i64: 1>, scalar_prefetch = 0 : i64, scratch_operands = 0 : i64, tpu.core_type = #tpu.core_type<tc>, window_params = [{transform_indices = @transform_0, window_bounds = array<i64: 16, 128>}, {pipeline_mode = #tpu.pipeline_mode<synchronous>, transform_indices = @transform_1, window_bounds = array<i64: 128, 128>}, {pipeline_mode = #tpu.pipeline_mode<synchronous>, transform_indices = @transform_2, window_bounds = array<i64: 1, 128>}, {transform_indices = @transform_3, window_bounds = array<i64: 16, 128>}]} {
    %c0 = arith.constant 0 : index
    %c0_0 = arith.constant 0 : index
    %0 = vector.load %arg1[%c0, %c0_0] : memref<16x128xbf16, #tpu.memory_space<vmem>>, vector<16x128xbf16>
    %c0_1 = arith.constant 0 : index
    %c0_2 = arith.constant 0 : index
    %1 = vector.load %arg2[%c0_1, %c0_2] : memref<128x128xbf16, #tpu.memory_space<vmem>>, vector<128x128xbf16>
    %cst = arith.constant dense<0.000000e+00> : vector<16x128xf32>
    %2 = tpu.matmul %0, %1, %cst {dimension_numbers = #tpu.dot_dimension_numbers<[1], [1], [0], [0], [0, 0, 1, 0], [], []>} : vector<16x128xbf16>, vector<128x128xbf16>, vector<16x128xf32> -> vector<16x128xf32>
    %c0_3 = arith.constant 0 : index
    %c0_4 = arith.constant 0 : index
    %3 = vector.load %arg3[%c0_3, %c0_4] : memref<1x128xf32, #tpu.memory_space<vmem>>, vector<1x128xf32>
    %4 = vector.broadcast %3 : vector<1x128xf32> to vector<16x128xf32>
    %5 = arith.addf %2, %4 : vector<16x128xf32>
    %cst_5 = arith.constant 5.000000e-01 : f32
    %6 = vector.broadcast %cst_5 : f32 to vector<16x128xf32>
    %7 = arith.mulf %5, %6 : vector<16x128xf32>
    %cst_6 = arith.constant 0.707106769 : f32
    %8 = vector.broadcast %cst_6 : f32 to vector<16x128xf32>
    %9 = arith.mulf %5, %8 : vector<16x128xf32>
    %10 = math.erf %9 : vector<16x128xf32>
    %cst_7 = arith.constant 1.000000e+00 : f32
    %11 = vector.broadcast %cst_7 : f32 to vector<16x128xf32>
    %12 = arith.addf %11, %10 : vector<16x128xf32>
    %13 = arith.mulf %7, %12 : vector<16x128xf32>
    %c0_8 = arith.constant 0 : index
    %c0_9 = arith.constant 0 : index
    %14 = vector.load %arg4[%c0_8, %c0_9] : memref<16x128xf32, #tpu.memory_space<vmem>>, vector<16x128xf32>
    tpu.vector_store %arg4[%c0_8, %c0_9], %13 {strides = array<i32>} : memref<16x128xf32, #tpu.memory_space<vmem>>, vector<16x128xf32>,
    return
  }
  func.func @transform_0(%arg0: i32) -> (i32, i32) {
    %c0_i32 = arith.constant 0 : i32
    %c0_i32_0 = arith.constant 0 : i32
    return %arg0, %c0_i32 : i32, i32
  }
  func.func @transform_1(%arg0: i32) -> (i32, i32) {
    %c0_i32 = arith.constant 0 : i32
    %c0_i32_0 = arith.constant 0 : i32
    %c0_i32_1 = arith.constant 0 : i32
    return %c0_i32, %c0_i32_0 : i32, i32
  }
  func.func @transform_2(%arg0: i32) -> (i32, i32) {
    %c0_i32 = arith.constant 0 : i32
    %c0_i32_0 = arith.constant 0 : i32
    %c0_i32_1 = arith.constant 0 : i32
    return %c0_i32, %c0_i32_0 : i32, i32
  }
  func.func @transform_3(%arg0: i32) -> (i32, i32) {
    %c0_i32 = arith.constant 0 : i32
    %c0_i32_0 = arith.constant 0 : i32
    return %arg0, %c0_i32 : i32, i32
  }
}

</mosaic_0001>

<bundles_post_ra>
// kernel: tpu_custom_call.1
= control target key start
LH: loop header
LB: loop body
LE: loop exit
PB: predicated region body
PF: predicated region fallthrough
CT: control target
= control target key end

     0   :  { %8 = vsyncpa [#allocation3], 0  ;;  %s362_s0 = inlined_call_operand.hbm [shape: bf16[16,128], index: 0, kind: input, shape index: {}]   ;;  %s363_s1 = inlined_call_operand.hbm [shape: bf16[128,128], index: 1, kind: input, shape index: {}]   ;;  %s364_s2 = inlined_call_operand.vmem [shape: f32[1,128], index: 2, kind: input, shape index: {}]   ;;  %s365_s3 = inlined_call_operand.hbm [shape: f32[16,128], index: 3, kind: output, shape index: {}]  }
   0x1   :  { %9 = vsyncpa [#allocation6], 0 }
   0x2   :  { %10 = vsyncpa [#allocation4], 0  ;;  %s321_s12 = smov [#allocation2]  }
   0x3   :  { %s16_s13 = sshll.u32 %s321_s12, 4  ;;  %s17_s13 = int_to_ptr.vmem [resolvable:$true] %s16_s13 }
   0x4   :  { %s263_s14 = scalar_lea.vmem %s17_s13, 128  ;;  %p268_p1 = scmp.lt.s32.totalorder %s17_s13, %s17_s13 }
   0x5   :  { %p264_p0 = scmp.ne.s32.totalorder %s17_s13, %s263_s14  ;;  %p269_p2 = scmp.lt.s32.totalorder %s263_s14, %s263_s14 }
   0x7   :  { %p270_p3 = por %p269_p2, %p268_p1 }
   0x9   :  { %p271_p4 = pnand %p270_p3, %p264_p0 }
   0xb   :  { %274 = shalt.err (!%p271_p4)
}
   0xc   :  { %s322_s15 = smov 64   ;;  %s323_s16 = smov 4  }
   0xd   :  { %22 = dma.hbm_to_vmem [thread:$0]  %s362_s0, 128, %s17_s13, [#allocation3], %s322_s15, %s322_s15, %s323_s16  }
   0xe   :  { %s324_s19 = smov [#allocation5]  }
   0xf   :  { %s28_s20 = sshll.u32 %s324_s19, 4  ;;  %s29_s20 = int_to_ptr.vmem [resolvable:$true] %s28_s20 }
  0x10   :  { %s283_s21 = scalar_lea.vmem %s29_s20, 1024  ;;  %p288_p6 = scmp.lt.s32.totalorder %s29_s20, %s29_s20 }
  0x11   :  { %p284_p5 = scmp.ne.s32.totalorder %s29_s20, %s283_s21  ;;  %p289_p7 = scmp.lt.s32.totalorder %s283_s21, %s283_s21 }
  0x13   :  { %p290_p8 = por %p289_p7, %p288_p6 }
  0x15   :  { %p291_p9 = pnand %p290_p8, %p284_p5 }
  0x17   :  { %294 = shalt.err (!%p291_p9)
}
  0x18   :  { %34 = dma.hbm_to_vmem [thread:$0]  %s363_s1, 1024, %s29_s20, [#allocation6], %s322_s15, %s322_s15, %s323_s16  }
  0x19   :  { %315 = dma.done.wait [#allocation3], 128  }
  0x1a   :  { %316 = vsyncadd [#allocation3], 4294967168 }
  0x1b   :  { %317 = dma.done.wait [#allocation6], 1024  }
  0x1c   :  { %318 = vsyncadd [#allocation6], 4294966272  ;;  %v325_v0 = vmov 0.0   ;;  %vm326_vm0 = vmmov 0   ;;  %v242_v1 = vld [vmem:[#allocation5 + $0x38] sm:$0xff]   ;;  %v243_v2 = vld [vmem:[#allocation5 + $0x30] sm:$0xff]  }
  0x1d   :  { %213 = vmatprep.subr.bf16.mxu0 %v325_v0  ;;  %229 = vmatprep.mubr.msk.bf16.mxu0 %vm326_vm0, %v325_v0  ;;  %v244_v3 = vld [vmem:[#allocation5 + $0x28] sm:$0xff]   ;;  %v245_v4 = vld [vmem:[#allocation5 + $0x20] sm:$0xff]   ;;  %v246_v5 = vld [vmem:[#allocation5 + $0x18] sm:$0xff]   ;;  %s327_s24 = smov [#allocation7]  }
  0x1e   :  { %214 = vmatpush3.bf16.xpose.msra.mxu0 %v242_v1  ;;  %v247_v6 = vld [vmem:[#allocation5 + $0x10] sm:$0xff]   ;;  %v248_v7 = vld [vmem:[#allocation5 + $0x8] sm:$0xff]   ;;  %v249_v8 = vld [vmem:[#allocation5] sm:$0xff]   ;;  %s181_s25 = sshll.u32 %s327_s24, 4  ;;  %s182_s25 = int_to_ptr.vmem [resolvable:$true] %s181_s25 }
  0x1f   :  { %215 = vmatprep.subr.bf16.mxu0 %v325_v0  ;;  %v250_v9 = vld [vmem:[#allocation2] sm:$0xff]   ;;  %p300_p11 = scmp.lt.s32.totalorder %s182_s25, %s182_s25 }
  0x20   :  { %v194_v10 = vld [vmem:[%s364_s2] ss:$0 sm:$0xff]  ;;  %s295_s2 = scalar_lea.vmem %s182_s25, 256 }
  0x21   :  { %p296_p10 = scmp.ne.s32.totalorder %s182_s25, %s295_s2  ;;  %p301_p12 = scmp.lt.s32.totalorder %s295_s2, %s295_s2 }
  0x23   :  { %p302_p13 = por %p301_p12, %p300_p11 }
  0x25   :  { %p303_p0 = pnand %p302_p13, %p296_p10 }
  0x26   :  { %216 = vmatpush3.bf16.xpose.msra.mxu0 %v243_v2 }
  0x27   :  { %217 = vmatprep.subr.bf16.mxu0 %v325_v0 }
  0x2e   :  { %218 = vmatpush3.bf16.xpose.msra.mxu0 %v244_v3 }
  0x2f   :  { %219 = vmatprep.subr.bf16.mxu0 %v325_v0 }
  0x36   :  { %220 = vmatpush3.bf16.xpose.msra.mxu0 %v245_v4 }
  0x37   :  { %221 = vmatprep.subr.bf16.mxu0 %v325_v0 }
  0x3e   :  { %222 = vmatpush3.bf16.xpose.msra.mxu0 %v246_v5 }
  0x3f   :  { %223 = vmatprep.subr.bf16.mxu0 %v325_v0 }
  0x46   :  { %224 = vmatpush3.bf16.xpose.msra.mxu0 %v247_v6 }
  0x47   :  { %225 = vmatprep.subr.bf16.mxu0 %v325_v0 }
  0x4e   :  { %226 = vmatpush3.bf16.xpose.msra.mxu0 %v248_v7 }
  0x4f   :  { %227 = vmatprep.subr.bf16.mxu0 %v325_v0 }
  0x56   :  { %228 = vmatpush3.bf16.xpose.msra.mxu0 %v249_v8 }
  0x5d   :  { %230 = vmatmul.mubr.bf16.vlgmr.msra.gmra.mxu0 %v250_v9 }
 0x11d   :  { %v157_v11 = vpop.f32.mrf.mxu0 }
 0x11e   :  { %v158_v12 = vadd.f32 %v194_v10, %v157_v11 }
 0x11f   :  { %v231_v13 = vpop.f32.mrf.mxu0 }
 0x120   :  { %v166_v14 = vmul.f32 0.70710677, %v158_v12  ;;  %v164_v20 = vmul.f32 0.5, %v158_v12 }
 0x121   :  { %v160_v15 = vpop.f32.mrf.mxu0 }
 0x122   :  { %251 = verf.f32 %v166_v14  ;;  %v161_v16 = vadd.f32 %v194_v10, %v160_v15 }
 0x123   :  { %v232_v17 = vpop.f32.mrf.mxu0 }
 0x124   :  { %v167_v18 = vmul.f32 0.70710677, %v161_v16  ;;  %v165_v24 = vmul.f32 0.5, %v161_v16 }
 0x126   :  { %253 = verf.f32 %v167_v18 }
 0x12f   :  { %v252_v19 = vpop.eup %251 }
 0x130   :  { %v170_v21 = vadd.f32 1.0, %v252_v19 }
 0x132   :  { %v172_v22 = vmul.f32 %v170_v21, %v164_v20 }
 0x133   :  { %v254_v23 = vpop.eup %253 }
 0x134   :  { %174 = vst [vmem:[#allocation7] sm:$0xff] %v172_v22  ;;  %v171_v25 = vadd.f32 1.0, %v254_v23 }
 0x136   :  { %v173_v26 = vmul.f32 %v171_v25, %v165_v24 }
 0x138   :  { %175 = vst [vmem:[#allocation7 + $0x8] sm:$0xff] %v173_v26 }
 0x139   :  { %306 = shalt.err (!%p303_p0)
}
 0x13a   :  { %s328_s26 = smov 128   ;;  %s329_s27 = smov 8  }
 0x13b   :  { %187 = dma.vmem_to_hbm [thread:$0]  %s182_s25, 256, %s365_s3, [#allocation4], %s328_s26, %s328_s26, %s329_s27  }
 0x13c   :  { %319 = dma.done.wait [#allocation4], 256  }
 0x13d   :  { %320 = vsyncadd [#allocation4], 4294967040 }
 0x13e   :  { %191 = vsyncpa [#allocation3], 1 }
 0x13f   :  { %192 = vsyncpa [#allocation6], 1 }
 0x140   :  { %193 = vsyncpa [#allocation4], 1 }

</bundles_post_ra>
